<compile_context>
chip_gen: v7x
topology: tpu7x:2x2x1
jax: 0.10.0
libtpu: 0.0.40
codegen_flags: <defaults>
</compile_context>

<pallas_src>
import functools

import jax
import jax.numpy as jnp
from jax import lax
from jax.experimental import pallas as pl
from jax.experimental.pallas import tpu as pltpu


# ----------------------------- Pallas kernel ------------------------------- #

def conv_bn_silu_kernel(w_ref, p_ref, gamma_ref, beta_ref, o_ref, *, m, eps):
    """Fused im2col-conv matmul + BatchNorm(batch stats) + SiLU.

    w_ref:     (Cout, K)   bf16 weight matrix, K ordered (cin, kh, kw)
    p_ref:     (K, M)      bf16 im2col patches, M = N*OH*OW (lane axis)
    gamma_ref: (Cout, 1)   f32 BN gamma
    beta_ref:  (Cout, 1)   f32 BN beta
    o_ref:     (Cout, M)   f32 output (lane-dense along M)
    """
    # Conv as one MXU matmul: bf16 x bf16 -> f32 accumulation.
    y = jnp.dot(w_ref[...], p_ref[...], preferred_element_type=jnp.float32)

    # BatchNorm2d training-mode batch statistics over the N*OH*OW axis.
    # Two-pass variance (subtract mean, then square) avoids cancellation and is
    # free here because y is VMEM resident.
    inv_m = 1.0 / m
    mean = jnp.sum(y, axis=1, keepdims=True) * inv_m            # (Cout, 1)
    d = y - mean
    var = jnp.sum(d * d, axis=1, keepdims=True) * inv_m         # biased variance

    scale = gamma_ref[...] * lax.rsqrt(var + eps)                # (Cout, 1)
    z = d * scale + beta_ref[...]                                # BN affine

    # SiLU via EUP sigmoid (separate bundle slot from the VPU mul).
    o_ref[...] = z * jax.nn.sigmoid(z)


# ------------------------------ JAX wrapper -------------------------------- #

@functools.partial(jax.jit, static_argnames=("stride", "padding", "eps"))
def conv_block_forward(x_nchw, weight, gamma, beta, *, stride=1, padding=1,
                       eps=1e-5):
    N, Cin, H, W = x_nchw.shape
    Cout, _, KH, KW = weight.shape
    OH = (H + 2 * padding - KH) // stride + 1
    OW = (W + 2 * padding - KW) // stride + 1
    M = N * OH * OW
    K = Cin * KH * KW

    # --- XLA glue: build im2col patches DIRECTLY in (K, M) order ------------ #
    # Transpose only the small input to (Cin, N, H, W) (bf16 to halve glue
    # bytes; slicing/stacking is exact so this equals im2col-then-cast), then
    # pad and stack the KH*KW shifted slabs on axis=1 so the reshape to (K, M)
    # is a no-copy flatten with K ordered (cin, kh, kw).
    x_cn = x_nchw.astype(jnp.bfloat16).transpose(1, 0, 2, 3)     # (Cin, N, H, W)
    xp = jnp.pad(x_cn, ((0, 0), (0, 0), (padding, padding), (padding, padding)))
    slabs = []
    for kh in range(KH):
        for kw in range(KW):
            slabs.append(xp[:, :, kh:kh + stride * OH:stride,
                                  kw:kw + stride * OW:stride])   # (Cin, N, OH, OW)
    patches = jnp.stack(slabs, axis=1).reshape(K, M)             # (K, M), bf16

    # PyTorch weight (Cout, Cin, KH, KW) flattens natively to (Cout, K) with the
    # same (cin, kh, kw) ordering.
    w_cm = weight.reshape(Cout, K).astype(jnp.bfloat16)

    gamma_c = gamma.reshape(Cout, 1).astype(jnp.float32)
    beta_c = beta.reshape(Cout, 1).astype(jnp.float32)

    kernel = functools.partial(conv_bn_silu_kernel, m=float(M), eps=float(eps))

    # Whole problem is VMEM resident (patches ~36 KB bf16, output ~16 KB f32):
    # no grid, full-array VMEM blocks, single fused launch.
    vmem_spec = pl.BlockSpec(memory_space=pltpu.MemorySpace.VMEM)
    out_cm = pl.pallas_call(
        kernel,
        out_shape=jax.ShapeDtypeStruct((Cout, M), jnp.float32),
        in_specs=[vmem_spec, vmem_spec, vmem_spec, vmem_spec],
        out_specs=vmem_spec,
    )(w_cm, patches, gamma_c, beta_c)

    # Glue: (Cout, M) -> NCHW, kept only to match the PyTorch module's output
    # layout; a channels-major consumer could take out_cm directly.
    return out_cm.reshape(Cout, N, OH, OW).transpose(1, 0, 2, 3)

    # TODO(synk): BatchNorm running_mean/running_var momentum updates are not
    # computed or returned (forward activation only, matching training-mode
    # batch-stat normalization).


# ------------------------------ reference ---------------------------------- #

def reference(x, weight, gamma, beta, *, stride=1, padding=1, eps=1e-5):
    y = lax.conv_general_dilated(
        x.astype(jnp.float32), weight.astype(jnp.float32),
        window_strides=(stride, stride),
        padding=[(padding, padding), (padding, padding)],
        dimension_numbers=("NCHW", "OIHW", "NCHW"),
        precision=lax.Precision.HIGHEST)
    mean = y.mean(axis=(0, 2, 3), keepdims=True)
    var = y.var(axis=(0, 2, 3), keepdims=True)     # biased, like PyTorch BN fwd
    z = (y - mean) / jnp.sqrt(var + eps) * gamma[None, :, None, None] \
        + beta[None, :, None, None]
    return z * jax.nn.sigmoid(z)


# --------------------------------- main ------------------------------------ #

if __name__ == "__main__":
    key = jax.random.PRNGKey(0)
    k_x, k_w, k_g, k_b = jax.random.split(key, 4)

    N, Cin, H, W = 2, 4, 16, 16
    Cout, KH, KW = 8, 3, 3
    stride, padding = 1, 1

    x = jax.random.normal(k_x, (N, Cin, H, W), dtype=jnp.float32)
    weight = jax.random.normal(k_w, (Cout, Cin, KH, KW), dtype=jnp.float32) * 0.1
    gamma = 1.0 + 0.1 * jax.random.normal(k_g, (Cout,), dtype=jnp.float32)
    beta = 0.1 * jax.random.normal(k_b, (Cout,), dtype=jnp.float32)

    out = conv_block_forward(x, weight, gamma, beta,
                             stride=stride, padding=padding)
    out = jax.block_until_ready(out)

    ref = reference(x, weight, gamma, beta, stride=stride, padding=padding)
    assert out.shape == ref.shape == (N, Cout, H, W)
    # Tolerance reflects deliberate bf16 MXU operands (f32 accumulation + f32
    # BN/SiLU math); a layout/indexing bug would produce O(1) errors.
    err = float(jnp.max(jnp.abs(out - ref)))
    assert err < 5e-2, f"max abs error too large: {err}"

    print("KERNEL_OK")
</pallas_src>

<mosaic_0001>
module attributes {stable_mosaic.version = 11 : i64} {
  func.func @conv_bn_silu_kernel(%arg0: memref<8x36xbf16, #tpu.memory_space<vmem>>, %arg1: memref<36x512xbf16, #tpu.memory_space<vmem>>, %arg2: memref<8x1xf32, #tpu.memory_space<vmem>>, %arg3: memref<8x1xf32, #tpu.memory_space<vmem>>, %arg4: memref<8x512xf32, #tpu.memory_space<vmem>>) attributes {dimension_semantics = [], scalar_prefetch = 0 : i64, scratch_operands = 0 : i64, tpu.core_type = #tpu.core_type<tc>} {
    %c0 = arith.constant 0 : index
    %c0_0 = arith.constant 0 : index
    %0 = vector.load %arg0[%c0, %c0_0] : memref<8x36xbf16, #tpu.memory_space<vmem>>, vector<8x36xbf16>
    %c0_1 = arith.constant 0 : index
    %c0_2 = arith.constant 0 : index
    %1 = vector.load %arg1[%c0_1, %c0_2] : memref<36x512xbf16, #tpu.memory_space<vmem>>, vector<36x512xbf16>
    %cst = arith.constant dense<0.000000e+00> : vector<8x512xf32>
    %2 = tpu.matmul %0, %1, %cst {dimension_numbers = #tpu.dot_dimension_numbers<[1], [0], [0], [1], [0, 0, 1, 1], [], []>} : vector<8x36xbf16>, vector<36x512xbf16>, vector<8x512xf32> -> vector<8x512xf32>
    %cst_3 = arith.constant dense<0.000000e+00> : vector<8xf32>
    %3 = vector.multi_reduction <add>, %2, %cst_3 [1] : vector<8x512xf32> to vector<8xf32>
    %4 = vector.shape_cast %3 : vector<8xf32> to vector<8x1xf32>
    %cst_4 = arith.constant 0.001953125 : f32
    %5 = vector.broadcast %cst_4 : f32 to vector<8x1xf32>
    %6 = arith.mulf %4, %5 : vector<8x1xf32>
    %7 = vector.broadcast %6 : vector<8x1xf32> to vector<8x512xf32>
    %8 = arith.subf %2, %7 : vector<8x512xf32>
    %9 = arith.mulf %8, %8 : vector<8x512xf32>
    %cst_5 = arith.constant dense<0.000000e+00> : vector<8xf32>
    %10 = vector.multi_reduction <add>, %9, %cst_5 [1] : vector<8x512xf32> to vector<8xf32>
    %11 = vector.shape_cast %10 : vector<8xf32> to vector<8x1xf32>
    %cst_6 = arith.constant 0.001953125 : f32
    %12 = vector.broadcast %cst_6 : f32 to vector<8x1xf32>
    %13 = arith.mulf %11, %12 : vector<8x1xf32>
    %c0_7 = arith.constant 0 : index
    %c0_8 = arith.constant 0 : index
    %14 = vector.load %arg2[%c0_7, %c0_8] : memref<8x1xf32, #tpu.memory_space<vmem>>, vector<8x1xf32>
    %cst_9 = arith.constant 9.99999974E-6 : f32
    %15 = vector.broadcast %cst_9 : f32 to vector<8x1xf32>
    %16 = arith.addf %13, %15 : vector<8x1xf32>
    %17 = math.rsqrt %16 : vector<8x1xf32>
    %18 = arith.mulf %14, %17 : vector<8x1xf32>
    %19 = vector.broadcast %18 : vector<8x1xf32> to vector<8x512xf32>
    %20 = arith.mulf %8, %19 : vector<8x512xf32>
    %c0_10 = arith.constant 0 : index
    %c0_11 = arith.constant 0 : index
    %21 = vector.load %arg3[%c0_10, %c0_11] : memref<8x1xf32, #tpu.memory_space<vmem>>, vector<8x1xf32>
    %22 = vector.broadcast %21 : vector<8x1xf32> to vector<8x512xf32>
    %23 = arith.addf %20, %22 : vector<8x512xf32>
    %24 = arith.negf %23 : vector<8x512xf32>
    %25 = math.exp %24 : vector<8x512xf32>
    %cst_12 = arith.constant 1.000000e+00 : f32
    %26 = vector.broadcast %cst_12 : f32 to vector<8x512xf32>
    %27 = arith.addf %26, %25 : vector<8x512xf32>
    %28 = arith.divf %26, %27 : vector<8x512xf32>
    %29 = arith.mulf %23, %28 : vector<8x512xf32>
    %c0_13 = arith.constant 0 : index
    %c0_14 = arith.constant 0 : index
    %30 = vector.load %arg4[%c0_13, %c0_14] : memref<8x512xf32, #tpu.memory_space<vmem>>, vector<8x512xf32>
    tpu.vector_store %arg4[%c0_13, %c0_14], %29 {strides = array<i32>} : memref<8x512xf32, #tpu.memory_space<vmem>>, vector<8x512xf32>,
    return
  }
}

</mosaic_0001>

<bundles_post_ra>
// kernel: conv_block_forward.1
= control target key start
LH: loop header
LB: loop body
LE: loop exit
PB: predicated region body
PF: predicated region fallthrough
CT: control target
= control target key end

     0   :  { %v314_v1 = vmov 0   ;;  %vm83_vm0 = vcmask 1041408   ;;  %vm79_vm1 = vcmask 293888   ;;  %s391_s1 = inlined_call_operand.vmem [shape: bf16[36,512], index: 1, kind: input, shape index: {}]   ;;  %s392_s0 = inlined_call_operand.vmem [shape: bf16[8,36], index: 0, kind: input, shape index: {}]   ;;  %s393_s2 = inlined_call_operand.vmem [shape: f32[8,1], index: 2, kind: input, shape index: {}]   ;;  %s394_s3 = inlined_call_operand.vmem [shape: f32[8,1], index: 3, kind: input, shape index: {}]   ;;  %s395_s4 = inlined_call_operand.vmem [shape: f32[8,512], index: 4, kind: output, shape index: {}]  }
   0x1   :  { %v280_v0 = vld [vmem:[%s391_s1 + $0x4] ss:$16 sps:$4 sm:$0xff]   ;;  %128 = vmatprep.mubr.bf16.mxu0 %v314_v1  ;;  %169 = vmatprep.mubr.bf16.mxu1 %v314_v1  ;;  %v282_v2 = vld [vmem:[%s391_s1 + $0xc] ss:$16 sps:$4 sm:$0xff]   ;;  %v284_v3 = vld [vmem:[%s391_s1] ss:$16 sps:$4 sm:$0xff]  }
   0x2   :  { %278 = vset.pattern.permute.xlu1 %v314_v1  ;;  %279 = vset.pattern.permute.xlu0 %v314_v1  ;;  %v285_v4 = vld [vmem:[%s391_s1 + $0x8] ss:$16 sps:$4 sm:$0xff]   ;;  %v286_v5 = vld [vmem:[%s391_s1 + $0x24] ss:$16 sps:$4 sm:$0xff]   ;;  %v288_v6 = vld [vmem:[%s391_s1 + $0x2c] ss:$16 sps:$4 sm:$0xff]  }
   0x3   :  { %96 = vmatprep.subr.bf16.mxu0 %v280_v0  ;;  %137 = vmatprep.subr.bf16.mxu1 %v282_v2  ;;  %v290_v7 = vld [vmem:[%s391_s1 + $0x20] ss:$16 sps:$4 sm:$0xff]   ;;  %v291_v8 = vld [vmem:[%s391_s1 + $0x28] ss:$16 sps:$4 sm:$0xff]  }
   0x4   :  { %97 = vmatpush1.bf16.msra.mxu0 %v284_v3  ;;  %138 = vmatpush1.bf16.msra.mxu1 %v285_v4  ;;  %v27_v9 = vld [vmem:[%s391_s1 + $0x40] sm:$0x33]  ;;  %v28_v10 = vld [vmem:[%s391_s1 + $0x48] sm:$0x33] }
   0x5   :  { %98 = vmatprep.subr.bf16.mxu0 %v286_v5  ;;  %139 = vmatprep.subr.bf16.mxu1 %v288_v6  ;;  %v266_v11 = vcombine.high %v27_v9, %v27_v9  ;;  %v268_v12 = vcombine.high %v28_v10, %v28_v10  ;;  %v265_v13 = vcombine.low %v27_v9, %v27_v9  ;;  %v18_v17 = vld [vmem:[%s392_s0] sm:$0xf] }
   0x6   :  { %v267_v14 = vcombine.low %v28_v10, %v28_v10  ;;  %v198_v45 = vld [vmem:[%s393_s2] sm:$0xff] }
   0x7   :  { %v85_v15 = vsel %vm83_vm0, %v265_v13, 0  ;;  %v211_v48 = vld [vmem:[%s394_s3] sm:$0xff] }
   0x8   :  { %99 = vmatpush1.bf16.msra.mxu0 %v290_v7  ;;  %140 = vmatpush1.bf16.msra.mxu1 %v291_v8  ;;  %v91_v16 = vsel %vm83_vm0, %v267_v14, 0 }
   0x9   :  { %269 = vmatprep.subr.msk.bf16.mxu0 %vm83_vm0, %v266_v11  ;;  %271 = vmatprep.subr.msk.bf16.mxu1 %vm83_vm0, %v268_v12 }
   0xc   :  { %101 = vmatpush1.bf16.msra.mxu0 %v85_v15  ;;  %142 = vmatpush1.bf16.msra.mxu1 %v91_v16 }
   0xf   :  { %270 = vmatmul.mubr.msk.bf16.vlgmr.msra.gmra.mrb[0].mxu0 %vm79_vm1, %v18_v17  ;;  %272 = vmatmul.mubr.msk.bf16.vlgmr.msra.gmra.mrb[0].mxu1 %vm79_vm1, %v18_v17 }
  0xe2   :  { %v130_v18 = vpop.f32.mrb[0].mxu0  ;;  %v171_v19 = vpop.f32.mrb[0].mxu1 }
  0xe3   :  { %v132_v20 = vpop.f32.mrb[1].mxu0  ;;  %v173_v21 = vpop.f32.mrb[1].mxu1 }
  0xe4   :  { %v178_v22 = vadd.f32 %v132_v20, %v130_v18  ;;  %v134_v23 = vpop.f32.mrb[2].mxu0  ;;  %v175_v24 = vpop.f32.mrb[2].mxu1 }
  0xe5   :  { %v135_v25 = vpop.f32.mrb[3].mxu0  ;;  %v176_v26 = vpop.f32.mrb[3].mxu1 }
  0xe6   :  { %v179_v27 = vadd.f32 %v178_v22, %v171_v19 }
  0xe8   :  { %v180_v28 = vadd.f32 %v179_v27, %v173_v21 }
  0xea   :  { %181 = vadd.xlane.f32.xlu0 %v180_v28 }
 0x177   :  { %v182_v29 = vpop.xlane.xlu0 %181 }
 0x178   :  { %v183_v30 = vmul.f32 0.001953125, %v182_v29 }
 0x17a   :  { %v184_v31 = vsub.f32 %v130_v18, %v183_v30  ;;  %v185_v32 = vsub.f32 %v132_v20, %v183_v30  ;;  %v186_v33 = vsub.f32 %v171_v19, %v183_v30  ;;  %v187_v34 = vsub.f32 %v173_v21, %v183_v30 }
 0x17c   :  { %v188_v35 = vmul.f32 %v184_v31, %v184_v31  ;;  %v189_v36 = vmul.f32 %v185_v32, %v185_v32  ;;  %v190_v37 = vmul.f32 %v186_v33, %v186_v33  ;;  %v191_v39 = vmul.f32 %v187_v34, %v187_v34 }
 0x17e   :  { %v192_v38 = vadd.f32 %v189_v36, %v188_v35 }
 0x180   :  { %v193_v40 = vadd.f32 %v192_v38, %v190_v37 }
 0x182   :  { %v194_v41 = vadd.f32 %v193_v40, %v191_v39 }
 0x184   :  { %195 = vadd.xlane.f32.xlu0 %v194_v41 }
 0x211   :  { %v196_v42 = vpop.xlane.xlu0 %195 }
 0x212   :  { %v197_v43 = vmul.f32 0.001953125, %v196_v42 }
 0x214   :  { %v199_v44 = vadd.f32 1e-05, %v197_v43 }
 0x216   :  { %296 = vrsqrt.f32 %v199_v44 }
 0x220   :  { %v297_v46 = vpop.eup %296 }
 0x221   :  { %v201_v47 = vmul.f32 %v297_v46, %v198_v45 }
 0x223   :  { %204 = vperm.xlu1 %278, %v201_v47  }
 0x227   :  { %214 = vperm.xlu1 %278, %v211_v48  }
 0x2a2   :  { %v205_v49 = vpop.permute.xlu1 %204 }
 0x2a3   :  { %v207_v50 = vmul.f32 %v205_v49, %v184_v31  ;;  %v208_v51 = vmul.f32 %v205_v49, %v185_v32  ;;  %v209_v52 = vmul.f32 %v205_v49, %v186_v33  ;;  %v210_v53 = vmul.f32 %v205_v49, %v187_v34 }
 0x2a6   :  { %v215_v54 = vpop.permute.xlu1 %214 }
 0x2a7   :  { %v217_v55 = vadd.f32 %v215_v54, %v207_v50  ;;  %v218_v56 = vadd.f32 %v215_v54, %v208_v51  ;;  %v219_v57 = vadd.f32 %v215_v54, %v209_v52  ;;  %v220_v58 = vadd.f32 %v215_v54, %v210_v53 }
 0x2a9   :  { %v273_v59 = vmul.f32 -1.442695, %v217_v55  ;;  %v274_v60 = vmul.f32 -1.442695, %v218_v56  ;;  %v275_v61 = vmul.f32 -1.442695, %v219_v57 }
 0x2aa   :  { %v276_v62 = vmul.f32 -1.442695, %v220_v58 }
 0x2ab   :  { %298 = vpow2.f32 %v273_v59 }
 0x2ac   :  { %300 = vpow2.f32 %v274_v60 }
 0x2ad   :  { %302 = vpow2.f32 %v275_v61 }
 0x2ae   :  { %304 = vpow2.f32 %v276_v62 }
 0x2b5   :  { %v299_v63 = vpop.eup %298 }
 0x2b6   :  { %v301_v0 = vpop.eup %300  ;;  %v233_v1 = vadd.f32 1.0, %v299_v63 }
 0x2b7   :  { %v303_v2 = vpop.eup %302  ;;  %v234_v3 = vadd.f32 1.0, %v301_v0 }
 0x2b8   :  { %v305_v4 = vpop.eup %304  ;;  %v235_v5 = vadd.f32 1.0, %v303_v2  ;;  %306 = vrcp.f32 %v233_v1 }
 0x2b9   :  { %v236_v6 = vadd.f32 1.0, %v305_v4  ;;  %308 = vrcp.f32 %v234_v3 }
 0x2ba   :  { %310 = vrcp.f32 %v235_v5 }
 0x2bb   :  { %312 = vrcp.f32 %v236_v6 }
 0x2c2   :  { %v307_v7 = vpop.eup %306 }
 0x2c3   :  { %v309_v8 = vpop.eup %308  ;;  %v245_v9 = vmul.f32 %v307_v7, %v217_v55 }
 0x2c4   :  { %v311_v10 = vpop.eup %310  ;;  %v246_v11 = vmul.f32 %v309_v8, %v218_v56 }
 0x2c5   :  { %v313_v12 = vpop.eup %312  ;;  %v247_v13 = vmul.f32 %v311_v10, %v219_v57  ;;  %249 = vst [vmem:[%s395_s4] sm:$0xff] %v245_v9 }
 0x2c6   :  { %v248_v14 = vmul.f32 %v313_v12, %v220_v58  ;;  %250 = vst [vmem:[%s395_s4 + $0x8] sm:$0xff] %v246_v11 }
 0x2c7   :  { %251 = vst [vmem:[%s395_s4 + $0x10] sm:$0xff] %v247_v13 }
 0x2c8   :  { %252 = vst [vmem:[%s395_s4 + $0x18] sm:$0xff] %v248_v14 }

</bundles_post_ra>
